<compile_context>
chip_gen: v7x
topology: tpu7x:2x2x1
jax: 0.10.0
libtpu: 0.0.40
codegen_flags: <defaults>
</compile_context>

<pallas_src>
import functools
import math

import jax
import jax.numpy as jnp
from jax import lax
from jax.experimental import pallas as pl
from jax.experimental.pallas import tpu as pltpu


def _pick_tile(dim, target, aligns=(128, 8)):
    """Largest tile <= target that divides dim, preferring larger alignments.
    Falls back to the full dimension (always a legal block)."""
    if dim <= target:
        return dim
    for align in aligns:
        t = (target // align) * align
        while t >= align:
            if dim % t == 0:
                return t
            t -= align
    return dim


_VMEM_CAP = None


def _vmem_cap():
    """3/4 of physical VMEM (<=48 MiB on v7x, ~96 MiB on v5e/v6e); safe fallback."""
    global _VMEM_CAP
    if _VMEM_CAP is None:
        try:
            _VMEM_CAP = int(pltpu.get_tpu_info().vmem_capacity_bytes * 3 // 4)
        except Exception:
            _VMEM_CAP = 48 * 1024 * 1024
    return _VMEM_CAP


def _vmem_limit(nbytes):
    return int(min(max(2 * nbytes, 8 * 1024 * 1024), _vmem_cap()))


# ----------------------------------------------------------------------------
# Kernel 1: HF Conv1D projection  y = x @ W + b   (tiled, f32 accumulation)
# ----------------------------------------------------------------------------
def _linear_kernel(x_ref, w_ref, b_ref, o_ref, acc_ref):
    k = pl.program_id(2)

    @pl.when(k == 0)
    def _init():
        acc_ref[...] = jnp.zeros_like(acc_ref)

    acc_ref[...] += jnp.dot(x_ref[...], w_ref[...],
                            preferred_element_type=jnp.float32)

    @pl.when(k == pl.num_programs(2) - 1)
    def _store():
        o_ref[...] = (acc_ref[...] + b_ref[...].astype(jnp.float32)
                      ).astype(o_ref.dtype)


def conv1d(x2d, w, b, *, out_dtype=None, tm=512, tn=512, tk=512):
    """HF Conv1D: (M, K) @ (K, N) + (N,) -> (M, N), MXU-tiled and pipelined."""
    M, K = x2d.shape
    Kw, N = w.shape
    assert Kw == K
    out_dtype = out_dtype or x2d.dtype

    btm = _pick_tile(M, tm, (8,))
    btn = _pick_tile(N, tn, (128,))
    btk = _pick_tile(K, tk, (128,))
    grid = (M // btm, N // btn, K // btk)

    in_item = jnp.dtype(x2d.dtype).itemsize
    out_item = jnp.dtype(out_dtype).itemsize
    est = (2 * (btm * btk + btk * btn + max(btn, 128)) * in_item
           + 2 * btm * btn * out_item + btm * btn * 4)

    return pl.pallas_call(
        _linear_kernel,
        out_shape=jax.ShapeDtypeStruct((M, N), out_dtype),
        grid=grid,
        in_specs=[
            pl.BlockSpec((btm, btk), lambda i, j, k: (i, k)),
            pl.BlockSpec((btk, btn), lambda i, j, k: (k, j)),
            pl.BlockSpec((1, btn), lambda i, j, k: (0, j)),
        ],
        out_specs=pl.BlockSpec((btm, btn), lambda i, j, k: (i, j)),
        scratch_shapes=[pltpu.VMEM((btm, btn), jnp.float32)],
        compiler_params=pltpu.CompilerParams(
            dimension_semantics=("parallel", "parallel", "arbitrary"),
            vmem_limit_bytes=_vmem_limit(est)),
    )(x2d, w, b.reshape(1, N))


# ----------------------------------------------------------------------------
# Kernel 2: flash-style causal attention over the fused (B, T, 3C) qkv buffer
# ----------------------------------------------------------------------------
def _flash_attn_kernel(q_ref, k_ref, v_ref, o_ref, m_ref, l_ref, acc_ref, *,
                       n_head, masked_bias, recip_approx):
    tq, c = q_ref.shape
    tkv = k_ref.shape[0]
    d = c // n_head

    qi = pl.program_id(1)
    kv = pl.program_id(2)
    nkv = pl.num_programs(2)

    q_first = qi * tq
    q_last = q_first + (tq - 1)
    kv_first = kv * tkv
    kv_last = kv_first + (tkv - 1)

    @pl.when(kv == 0)
    def _init():
        m_ref[...] = jnp.full(m_ref.shape, -jnp.inf, jnp.float32)
        l_ref[...] = jnp.zeros(l_ref.shape, jnp.float32)
        acc_ref[...] = jnp.zeros(acc_ref.shape, jnp.float32)

    def process(apply_mask):
        # 1/sqrt(D) is already folded into the c_attn Q columns (wrapper side).
        q = q_ref[...]
        k = k_ref[...]
        v = v_ref[...]
        if apply_mask:
            row = q_first + lax.broadcasted_iota(jnp.int32, (tq, tkv), 0)
            col = kv_first + lax.broadcasted_iota(jnp.int32, (tq, tkv), 1)
            keep = col <= row
        for h in range(n_head):
            sl = slice(h * d, (h + 1) * d)
            qh, kh, vh = q[:, sl], k[:, sl], v[:, sl]
            s = lax.dot_general(qh, kh, (((1,), (1,)), ((), ())),
                                preferred_element_type=jnp.float32)  # (tq,tkv)
            if apply_mask:
                s = jnp.where(keep, s, jnp.float32(masked_bias))
            m_prev = m_ref[h]                                         # (tq,1)
            m_new = jnp.maximum(m_prev, jnp.max(s, axis=-1, keepdims=True))
            alpha = jnp.exp(m_prev - m_new)
            p = jnp.exp(s - m_new)
            l_ref[h] = alpha * l_ref[h] + jnp.sum(p, axis=-1, keepdims=True)
            pv = lax.dot_general(p.astype(vh.dtype), vh,
                                 (((1,), (0,)), ((), ())),
                                 preferred_element_type=jnp.float32)  # (tq,d)
            acc_ref[h] = alpha * acc_ref[h] + pv
            m_ref[h] = m_new

    # Causal tile classification: fully-masked kv tiles do no work (and their
    # K/V blocks are never DMA'd thanks to the clamped index_map); the iota
    # mask is only applied on diagonal-straddling tiles.
    is_diag = jnp.logical_and(kv_first <= q_last, kv_last > q_first)
    is_full = kv_last <= q_first

    @pl.when(is_diag)
    def _diag():
        process(True)

    @pl.when(is_full)
    def _full():
        process(False)

    @pl.when(kv == nkv - 1)
    def _finalize():
        outs = []
        for h in range(n_head):
            inv_l = pl.reciprocal(l_ref[h], approx=recip_approx)
            outs.append(acc_ref[h] * inv_l)
        # Single lane-dense (tq, C) store in merged-heads layout.
        o_ref[...] = jnp.concatenate(outs, axis=-1).astype(o_ref.dtype)


def attention_core(qkv, *, n_head, out_dtype=None, q_block=128, kv_block=512,
                   masked_bias=-10000.0, recip_approx=False):
    B, T, C3 = qkv.shape
    assert C3 % 3 == 0
    C = C3 // 3
    assert C % n_head == 0
    D = C // n_head
    out_dtype = out_dtype or qkv.dtype

    bf16 = jnp.dtype(qkv.dtype) == jnp.bfloat16
    tq = _pick_tile(T, q_block, (16, 8) if bf16 else (8,))
    tkv = _pick_tile(T, kv_block, (128, 16, 8))
    grid = (B, T // tq, T // tkv)

    if C % 128 == 0:
        # q/k/v read directly out of the fused (B, T, 3C) buffer as column
        # blocks 0 / 1 / 2 of width C -> no split/merge-head transposes at all.
        args = (qkv, qkv, qkv)
        qc, kc, vc = 0, 1, 2
    else:
        # Fallback: explicit split keeps every block's last dim == full array
        # dim (always a legal TPU block shape).
        q, k, v = jnp.split(qkv, 3, axis=-1)
        args = (q, k, v)
        qc, kc, vc = 0, 0, 0

    # Causal clamp: kv blocks past the diagonal re-use the last useful block
    # index, so Pallas skips their HBM->VMEM copies entirely.
    def kv_index(b, i, j, col):
        j_max = (i * tq + tq - 1) // tkv
        return (b, jnp.minimum(j, j_max), col)

    q_spec = pl.BlockSpec((None, tq, C), lambda b, i, j: (b, i, qc))
    k_spec = pl.BlockSpec((None, tkv, C), lambda b, i, j: kv_index(b, i, j, kc))
    v_spec = pl.BlockSpec((None, tkv, C), lambda b, i, j: kv_index(b, i, j, vc))
    o_spec = pl.BlockSpec((None, tq, C), lambda b, i, j: (b, i, 0))

    item = jnp.dtype(qkv.dtype).itemsize
    est = (2 * (tq * C + 2 * tkv * C) * item
           + 2 * tq * C * jnp.dtype(out_dtype).itemsize
           + (2 * tq * 128 + n_head * tq * max(D, 128)) * 4)

    kern = functools.partial(_flash_attn_kernel, n_head=n_head,
                             masked_bias=masked_bias,
                             recip_approx=recip_approx)
    return pl.pallas_call(
        kern,
        out_shape=jax.ShapeDtypeStruct((B, T, C), out_dtype),
        grid=grid,
        in_specs=[q_spec, k_spec, v_spec],
        out_specs=o_spec,
        scratch_shapes=[
            pltpu.VMEM((n_head, tq, 1), jnp.float32),   # running max  m
            pltpu.VMEM((n_head, tq, 1), jnp.float32),   # running sum  l
            pltpu.VMEM((n_head, tq, D), jnp.float32),   # output accumulator
        ],
        compiler_params=pltpu.CompilerParams(
            dimension_semantics=("parallel", "parallel", "arbitrary"),
            vmem_limit_bytes=_vmem_limit(est)),
    )(*args)


# ----------------------------------------------------------------------------
# Full forward pass of Attention (eval mode, self-attention, no cache)
# ----------------------------------------------------------------------------
def attention_forward(hidden_states, params, *, n_head, scale=True,
                      q_block=128, kv_block=512):
    # TODO(synk): cross-attention (q_attn), layer_past / use_cache ("present"),
    # attention_mask / head_mask, output_attentions and training-mode dropout
    # are not implemented in the kernel path (identity / unused in eval).
    B, T, C = hidden_states.shape
    assert C % n_head == 0
    D = C // n_head
    dtype = hidden_states.dtype

    w_attn = params["c_attn_w"]
    b_attn = params["c_attn_b"]
    if scale:
        # Fold 1/sqrt(D) into the Q columns of c_attn: removes the per-kv-step
        # q rescale (+ f32<->bf16 recasts) inside the attention kernel.
        s = jnp.float32(1.0 / math.sqrt(D))
        col_scale = jnp.concatenate(
            [jnp.full((C,), s, jnp.float32), jnp.ones((2 * C,), jnp.float32)])
        w_attn = (w_attn.astype(jnp.float32) * col_scale[None, :]
                  ).astype(w_attn.dtype)
        b_attn = (b_attn.astype(jnp.float32) * col_scale).astype(b_attn.dtype)

    qkv = conv1d(hidden_states.reshape(B * T, C), w_attn, b_attn,
                 out_dtype=dtype)
    qkv = qkv.reshape(B, T, 3 * C)

    approx = jnp.dtype(dtype) == jnp.bfloat16
    attn = attention_core(qkv, n_head=n_head, out_dtype=dtype,
                          q_block=q_block, kv_block=kv_block,
                          recip_approx=approx)

    out = conv1d(attn.reshape(B * T, C),
                 params["c_proj_w"], params["c_proj_b"], out_dtype=dtype)
    return out.reshape(B, T, C)


# ----------------------------------------------------------------------------
# Deterministic parameter init (HF Conv1D: weight ~ N(0, 0.02), bias = 0)
# ----------------------------------------------------------------------------
def init_params(key, nx, dtype=jnp.float32):
    k1, k2 = jax.random.split(key)
    return {
        "c_attn_w": (0.02 * jax.random.normal(k1, (nx, 3 * nx), jnp.float32)
                     ).astype(dtype),
        "c_attn_b": jnp.zeros((3 * nx,), dtype),
        "c_proj_w": (0.02 * jax.random.normal(k2, (nx, nx), jnp.float32)
                     ).astype(dtype),
        "c_proj_b": jnp.zeros((nx,), dtype),
    }


# ----------------------------------------------------------------------------
# Pure-JAX f32 reference for correctness check
# ----------------------------------------------------------------------------
def attention_reference(x, params, *, n_head, scale=True):
    B, T, C = x.shape
    D = C // n_head
    x32 = x.astype(jnp.float32)
    w_a = params["c_attn_w"].astype(jnp.float32)
    b_a = params["c_attn_b"].astype(jnp.float32)
    w_p = params["c_proj_w"].astype(jnp.float32)
    b_p = params["c_proj_b"].astype(jnp.float32)
    qkv = (x32.reshape(B * T, C) @ w_a + b_a).reshape(B, T, 3 * C)
    q, k, v = jnp.split(qkv, 3, axis=-1)
    sh = lambda t: t.reshape(B, T, n_head, D).transpose(0, 2, 1, 3)
    q, k, v = sh(q), sh(k), sh(v)
    s = jnp.einsum("bhtd,bhsd->bhts", q, k)
    if scale:
        s = s / math.sqrt(D)
    causal = jnp.tril(jnp.ones((T, T), bool))
    s = jnp.where(causal[None, None], s, jnp.float32(-10000.0))
    p = jax.nn.softmax(s, axis=-1)
    a = jnp.einsum("bhts,bhsd->bhtd", p, v)
    a = a.transpose(0, 2, 1, 3).reshape(B * T, C)
    return (a @ w_p + b_p).reshape(B, T, C)


if __name__ == "__main__":
    B, T, NX, N_HEAD = 2, 128, 128, 4   # batch, seq (n_ctx), n_embd, heads

    key = jax.random.PRNGKey(0)
    k_x, k_p = jax.random.split(key)
    x = jax.random.normal(k_x, (B, T, NX), jnp.float32)
    params = init_params(k_p, NX, jnp.float32)

    ref = attention_reference(x, params, n_head=N_HEAD, scale=True)

    # f32, small q/kv tiles: exercises the online-softmax kv loop, the causal
    # tile-skipping logic and the clamped K/V index_map (4 q-tiles x 4 kv-tiles).
    out = jax.block_until_ready(
        attention_forward(x, params, n_head=N_HEAD, scale=True,
                          q_block=32, kv_block=32))
    assert out.shape == (B, T, NX)
    assert jnp.allclose(out, ref, atol=1e-5, rtol=1e-4), "f32 mismatch"

    # f32, default tiles (single kv tile, full-T blocks).
    out2 = jax.block_until_ready(
        attention_forward(x, params, n_head=N_HEAD, scale=True))
    assert jnp.allclose(out2, ref, atol=1e-5, rtol=1e-4), "f32 full-tile mismatch"

    # bf16 activations/weights with f32 accumulation (loose tolerance).
    xb = x.astype(jnp.bfloat16)
    pb = jax.tree_util.tree_map(lambda t: t.astype(jnp.bfloat16), params)
    outb = jax.block_until_ready(
        attention_forward(xb, pb, n_head=N_HEAD, scale=True,
                          q_block=32, kv_block=64)).astype(jnp.float32)
    assert jnp.allclose(outb, ref, atol=1e-2, rtol=1e-1), "bf16 mismatch"

    print("KERNEL_OK")
</pallas_src>

<mosaic_0001>
module attributes {stable_mosaic.version = 11 : i64} {
  func.func @_linear_kernel(%arg0: i32, %arg1: i32, %arg2: i32, %arg3: memref<256x128xf32, #tpu.memory_space<vmem>>, %arg4: memref<128x384xf32, #tpu.memory_space<vmem>>, %arg5: memref<1x384xf32, #tpu.memory_space<vmem>>, %arg6: memref<256x384xf32, #tpu.memory_space<vmem>>, %arg7: memref<256x384xf32, #tpu.memory_space<vmem>>) attributes {dimension_semantics = [#tpu.dimension_semantics<parallel>, #tpu.dimension_semantics<parallel>, #tpu.dimension_semantics<arbitrary>], iteration_bounds = array<i64: 1, 1, 1>, scalar_prefetch = 0 : i64, scratch_operands = 1 : i64, tpu.core_type = #tpu.core_type<tc>, window_params = [{transform_indices = @transform_0, window_bounds = array<i64: 256, 128>}, {transform_indices = @transform_1, window_bounds = array<i64: 128, 384>}, {transform_indices = @transform_2, window_bounds = array<i64: 1, 384>}, {transform_indices = @transform_3, window_bounds = array<i64: 256, 384>}]} {
    %c0_i32 = arith.constant 0 : i32
    %0 = arith.cmpi eq, %arg2, %c0_i32 : i32
    %1 = arith.extui %0 : i1 to i32
    %c0_i32_0 = arith.constant 0 : i32
    %2 = arith.cmpi ne, %1, %c0_i32_0 : i32
    scf.if %2 {
      %cst_10 = arith.constant 0.000000e+00 : f32
      %12 = vector.broadcast %cst_10 : f32 to vector<256x384xf32>
      %c0_11 = arith.constant 0 : index
      %c0_12 = arith.constant 0 : index
      %13 = vector.load %arg7[%c0_11, %c0_12] : memref<256x384xf32, #tpu.memory_space<vmem>>, vector<256x384xf32>
      tpu.vector_store %arg7[%c0_11, %c0_12], %12 {strides = array<i32>} : memref<256x384xf32, #tpu.memory_space<vmem>>, vector<256x384xf32>,
    } else {
    }
    %c0 = arith.constant 0 : index
    %c0_1 = arith.constant 0 : index
    %3 = vector.load %arg7[%c0, %c0_1] : memref<256x384xf32, #tpu.memory_space<vmem>>, vector<256x384xf32>
    %c0_2 = arith.constant 0 : index
    %c0_3 = arith.constant 0 : index
    %4 = vector.load %arg3[%c0_2, %c0_3] : memref<256x128xf32, #tpu.memory_space<vmem>>, vector<256x128xf32>
    %c0_4 = arith.constant 0 : index
    %c0_5 = arith.constant 0 : index
    %5 = vector.load %arg4[%c0_4, %c0_5] : memref<128x384xf32, #tpu.memory_space<vmem>>, vector<128x384xf32>
    %cst = arith.constant dense<0.000000e+00> : vector<256x384xf32>
    %6 = tpu.matmul %4, %5, %cst {dimension_numbers = #tpu.dot_dimension_numbers<[1], [0], [0], [1], [0, 0, 1, 1], [], []>} : vector<256x128xf32>, vector<128x384xf32>, vector<256x384xf32> -> vector<256x384xf32>
    %7 = arith.addf %3, %6 : vector<256x384xf32>
    %c0_6 = arith.constant 0 : index
    %c0_7 = arith.constant 0 : index
    %8 = vector.load %arg7[%c0_6, %c0_7] : memref<256x384xf32, #tpu.memory_space<vmem>>, vector<256x384xf32>
    tpu.vector_store %arg7[%c0_6, %c0_7], %7 {strides = array<i32>} : memref<256x384xf32, #tpu.memory_space<vmem>>, vector<256x384xf32>,
    %c0_i32_8 = arith.constant 0 : i32
    %9 = arith.cmpi eq, %arg2, %c0_i32_8 : i32
    %10 = arith.extui %9 : i1 to i32
    %c0_i32_9 = arith.constant 0 : i32
    %11 = arith.cmpi ne, %10, %c0_i32_9 : i32
    scf.if %11 {
      %c0_10 = arith.constant 0 : index
      %c0_11 = arith.constant 0 : index
      %12 = vector.load %arg7[%c0_10, %c0_11] : memref<256x384xf32, #tpu.memory_space<vmem>>, vector<256x384xf32>
      %c0_12 = arith.constant 0 : index
      %c0_13 = arith.constant 0 : index
      %13 = vector.load %arg5[%c0_12, %c0_13] : memref<1x384xf32, #tpu.memory_space<vmem>>, vector<1x384xf32>
      %14 = vector.broadcast %13 : vector<1x384xf32> to vector<256x384xf32>
      %15 = arith.addf %12, %14 : vector<256x384xf32>
      %c0_14 = arith.constant 0 : index
      %c0_15 = arith.constant 0 : index
      %16 = vector.load %arg6[%c0_14, %c0_15] : memref<256x384xf32, #tpu.memory_space<vmem>>, vector<256x384xf32>
      tpu.vector_store %arg6[%c0_14, %c0_15], %15 {strides = array<i32>} : memref<256x384xf32, #tpu.memory_space<vmem>>, vector<256x384xf32>,
    } else {
    }
    return
  }
  func.func @transform_0(%arg0: i32, %arg1: i32, %arg2: i32) -> (i32, i32) {
    %c0_i32 = arith.constant 0 : i32
    return %arg0, %arg2 : i32, i32
  }
  func.func @transform_1(%arg0: i32, %arg1: i32, %arg2: i32) -> (i32, i32) {
    %c0_i32 = arith.constant 0 : i32
    return %arg2, %arg1 : i32, i32
  }
  func.func @transform_2(%arg0: i32, %arg1: i32, %arg2: i32) -> (i32, i32) {
    %c0_i32 = arith.constant 0 : i32
    %c0_i32_0 = arith.constant 0 : i32
    return %c0_i32, %arg1 : i32, i32
  }
  func.func @transform_3(%arg0: i32, %arg1: i32, %arg2: i32) -> (i32, i32) {
    %c0_i32 = arith.constant 0 : i32
    return %arg0, %arg1 : i32, i32
  }
}

</mosaic_0001>

<bundles_post_ra>
// kernel: tpu_custom_call.1
= control target key start
LH: loop header
LB: loop body
LE: loop exit
PB: predicated region body
PF: predicated region fallthrough
CT: control target
= control target key end

     0   :  { %8 = vsyncpa [#allocation4], 0  ;;  %s1868_s0 = inlined_call_operand.hbm [shape: f32[256,128], index: 0, kind: input, shape index: {}]   ;;  %s1869_s1 = inlined_call_operand.hbm [shape: f32[128,384], index: 1, kind: input, shape index: {}]   ;;  %s1870_s2 = inlined_call_operand.vmem [shape: f32[1,384], index: 2, kind: input, shape index: {}]   ;;  %s1871_s3 = inlined_call_operand.hbm [shape: f32[256,384], index: 3, kind: output, shape index: {}]  }
   0x1   :  { %9 = vsyncpa [#allocation7], 0 }
   0x2   :  { %10 = vsyncpa [#allocation5], 0  ;;  %s1607_s12 = smov [#allocation3]   ;;  %s1535_s16 = scalar_lea.hbm %s1868_s0, 4096 }
   0x3   :  { %s16_s13 = sshll.u32 %s1607_s12, 4  ;;  %p1536_p0 = scmp.ne.s32.totalorder %s1868_s0, %s1535_s16  ;;  %s17_s13 = int_to_ptr.vmem [resolvable:$true] %s16_s13 }
   0x4   :  { %p1539_p1 = scmp.lt.u32.totalorder %s1535_s16, %s1868_s0 }
   0x6   :  { %p1541_p2 = pnand %p1539_p1, %p1536_p0 }
   0x8   :  { %1544 = shalt.err (!%p1541_p2)
}
   0x9   :  { %s1545_s21 = scalar_lea.vmem %s17_s13, 4096  ;;  %p1550_p4 = scmp.lt.s32.totalorder %s17_s13, %s17_s13 }
   0xa   :  { %p1546_p3 = scmp.ne.s32.totalorder %s17_s13, %s1545_s21  ;;  %p1551_p5 = scmp.lt.s32.totalorder %s1545_s21, %s1545_s21 }
   0xc   :  { %p1552_p6 = por %p1551_p5, %p1550_p4 }
   0xe   :  { %p1553_p7 = pnand %p1552_p6, %p1546_p3 }
  0x10   :  { %1556 = shalt.err (!%p1553_p7)
}
  0x11   :  { %s1608_s22 = smov 128   ;;  %s1609_s23 = smov 8  }
  0x12   :  { %22 = dma.hbm_to_vmem [thread:$0]  %s1868_s0, 4096, %s17_s13, [#allocation4], %s1608_s22, %s1608_s22, %s1609_s23  }
  0x13   :  { %s1610_s26 = smov [#allocation6]   ;;  %s1557_s30 = scalar_lea.hbm %s1869_s1, 6144 }
  0x14   :  { %s28_s27 = sshll.u32 %s1610_s26, 4  ;;  %p1558_p8 = scmp.ne.s32.totalorder %s1869_s1, %s1557_s30  ;;  %s29_s27 = int_to_ptr.vmem [resolvable:$true] %s28_s27 }
  0x15   :  { %p1561_p9 = scmp.lt.u32.totalorder %s1557_s30, %s1869_s1 }
  0x17   :  { %p1563_p10 = pnand %p1561_p9, %p1558_p8 }
  0x19   :  { %1566 = shalt.err (!%p1563_p10)
}
  0x1a   :  { %s1567_s8 = scalar_lea.vmem %s29_s27, 6144  ;;  %p1572_p12 = scmp.lt.s32.totalorder %s29_s27, %s29_s27 }
  0x1b   :  { %p1568_p11 = scmp.ne.s32.totalorder %s29_s27, %s1567_s8  ;;  %p1573_p13 = scmp.lt.s32.totalorder %s1567_s8, %s1567_s8 }
  0x1d   :  { %p1574_p0 = por %p1573_p13, %p1572_p12 }
  0x1f   :  { %p1575_p1 = pnand %p1574_p0, %p1568_p11 }
  0x21   :  { %1578 = shalt.err (!%p1575_p1)
}
  0x22   :  { %s1611_s0 = smov 384   ;;  %s1612_s9 = smov 24  }
  0x23   :  { %34 = dma.hbm_to_vmem [thread:$0]  %s1869_s1, 6144, %s29_s27, [#allocation7], %s1611_s0, %s1611_s0, %s1612_s9  }
  0x24   :  { %1601 = dma.done.wait [#allocation4], 4096  }
  0x25   :  { %1602 = vsyncadd [#allocation4], 4294963200 }
  0x26   :  { %1603 = dma.done.wait [#allocation7], 6144  }
  0x27   :  { %1604 = vsyncadd [#allocation7], 4294961152  ;;  %v1613_v0 = vmov 0.0   ;;  %v272_v1 = vld [vmem:[#allocation6 + $0x8] sm:$0xff]  ;;  %v275_v2 = vld [vmem:[#allocation6 + $0x20] sm:$0xff] }
  0x28   :  { %383 = vmatprep.mubr.f32.mxu0 %v1613_v0  ;;  %527 = vmatprep.mubr.f32.mxu1 %v1613_v0  ;;  %v271_v3 = vld [vmem:[#allocation6] sm:$0xff]  ;;  %v1447_v4 = vpack.c.bf16 %v275_v2, %v272_v1  ;;  %v274_v5 = vld [vmem:[#allocation6 + $0x18] sm:$0xff]  ;;  %v281_v7 = vld [vmem:[#allocation6 + $0x50] sm:$0xff] }
  0x29   :  { %v278_v6 = vld [vmem:[#allocation6 + $0x38] sm:$0xff]  ;;  %v1449_v8 = vpack.c.bf16 %v274_v5, %v271_v3  ;;  %v277_v10 = vld [vmem:[#allocation6 + $0x30] sm:$0xff]  ;;  %v280_v11 = vld [vmem:[#allocation6 + $0x48] sm:$0xff] }
  0x2a   :  { %v1451_v9 = vpack.c.bf16 %v281_v7, %v278_v6  ;;  %v284_v12 = vld [vmem:[#allocation6 + $0x68] sm:$0xff]  ;;  %1448 = vmatprep.subr.bf16.mxu0 %v1447_v4  ;;  %1511 = vmatprep.subr.bf16.mxu1 %v1447_v4  ;;  %v287_v13 = vld [vmem:[#allocation6 + $0x80] sm:$0xff]  ;;  %v1453_v14 = vpack.c.bf16 %v280_v11, %v277_v10  ;;  %v286_v17 = vld [vmem:[#allocation6 + $0x78] sm:$0xff] }
  0x2b   :  { %1450 = vmatpush1.bf16.msra.mxu0 %v1449_v8  ;;  %1519 = vmatpush1.bf16.msra.mxu1 %v1449_v8  ;;  %v1455_v15 = vpack.c.bf16 %v287_v13, %v284_v12  ;;  %v283_v16 = vld [vmem:[#allocation6 + $0x60] sm:$0xff]  ;;  %v290_v18 = vld [vmem:[#allocation6 + $0x98] sm:$0xff]  ;;  %v293_v19 = vld [vmem:[#allocation6 + $0xb0] sm:$0xff] }
  0x2c   :  { %1452 = vmatprep.subr.bf16.mxu0 %v1451_v9  ;;  %1512 = vmatprep.subr.bf16.mxu1 %v1451_v9  ;;  %v1457_v20 = vpack.c.bf16 %v286_v17, %v283_v16  ;;  %v1459_v21 = vpack.c.bf16 %v293_v19, %v290_v18  ;;  %v289_v22 = vld [vmem:[#allocation6 + $0x90] sm:$0xff]  ;;  %v292_v23 = vld [vmem:[#allocation6 + $0xa8] sm:$0xff]  ;;  %v299_v25 = vld [vmem:[#allocation6 + $0xe0] sm:$0xff] }
  0x2d   :  { %v296_v24 = vld [vmem:[#allocation6 + $0xc8] sm:$0xff]  ;;  %v1461_v26 = vpack.c.bf16 %v292_v23, %v289_v22  ;;  %v295_v28 = vld [vmem:[#allocation6 + $0xc0] sm:$0xff]  ;;  %v298_v29 = vld [vmem:[#allocation6 + $0xd8] sm:$0xff] }
  0x2e   :  { %v1463_v27 = vpack.c.bf16 %v299_v25, %v296_v24  ;;  %v302_v30 = vld [vmem:[#allocation6 + $0xf8] sm:$0xff]  ;;  %v305_v31 = vld [vmem:[#allocation6 + $0x110] sm:$0xff]  ;;  %v1465_v32 = vpack.c.bf16 %v298_v29, %v295_v28  ;;  %v304_v35 = vld [vmem:[#allocation6 + $0x108] sm:$0xff] }
  0x2f   :  { %1454 = vmatpush1.bf16.msra.mxu0 %v1453_v14  ;;  %1520 = vmatpush1.bf16.msra.mxu1 %v1453_v14  ;;  %v1467_v33 = vpack.c.bf16 %v305_v31, %v302_v30  ;;  %v301_v34 = vld [vmem:[#allocation6 + $0xf0] sm:$0xff]  ;;  %v308_v36 = vld [vmem:[#allocation6 + $0x128] sm:$0xff]  ;;  %v311_v37 = vld [vmem:[#allocation6 + $0x140] sm:$0xff] }
  0x30   :  { %1456 = vmatprep.subr.bf16.mxu0 %v1455_v15  ;;  %1513 = vmatprep.subr.bf16.mxu1 %v1455_v15  ;;  %v1469_v38 = vpack.c.bf16 %v304_v35, %v301_v34  ;;  %v1471_v39 = vpack.c.bf16 %v311_v37, %v308_v36  ;;  %v307_v40 = vld [vmem:[#allocation6 + $0x120] sm:$0xff]  ;;  %v310_v41 = vld [vmem:[#allocation6 + $0x138] sm:$0xff]  ;;  %v317_v43 = vld [vmem:[#allocation6 + $0x170] sm:$0xff] }
  0x31   :  { %v314_v42 = vld [vmem:[#allocation6 + $0x158] sm:$0xff]  ;;  %v1473_v44 = vpack.c.bf16 %v310_v41, %v307_v40  ;;  %v313_v46 = vld [vmem:[#allocation6 + $0x150] sm:$0xff]  ;;  %v316_v47 = vld [vmem:[#allocation6 + $0x168] sm:$0xff] }
  0x32   :  { %v1475_v45 = vpack.c.bf16 %v317_v43, %v314_v42  ;;  %v273_v48 = vld [vmem:[#allocation6 + $0x10] sm:$0xff]  ;;  %v276_v49 = vld [vmem:[#allocation6 + $0x28] sm:$0xff]  ;;  %v1477_v50 = vpack.c.bf16 %v316_v47, %v313_v46  ;;  %v279_v52 = vld [vmem:[#allocation6 + $0x40] sm:$0xff]  ;;  %v1094_v42 = vlaneseq }
  0x33   :  { %1458 = vmatpush1.bf16.msra.mxu0 %v1457_v20  ;;  %1521 = vmatpush1.bf16.msra.mxu1 %v1457_v20  ;;  %v1479_v51 = vpack.c.bf16 %v276_v49, %v273_v48  ;;  %v282_v53 = vld [vmem:[#allocation6 + $0x58] sm:$0xff]  ;;  %v1664_v54 = vld [vmem:[#allocation3] sm:$0xff]  ;;  %v285_v57 = vld [vmem:[#allocation6 + $0x70] sm:$0xff] }
  0x34   :  { %1460 = vmatprep.subr.bf16.mxu0 %v1459_v21  ;;  %1514 = vmatprep.subr.bf16.mxu1 %v1459_v21  ;;  %v1666_v55 = vld [vmem:[#allocation3 + $0xc0] sm:$0xff]  ;;  %v1483_v56 = vpack.c.bf16 %v282_v53, %v279_v52  ;;  %v288_v58 = vld [vmem:[#allocation6 + $0x88] sm:$0xff]  ;;  %v294_v63 = vld [vmem:[#allocation6 + $0xb8] sm:$0xff]  ;;  %v1738_v43 = vshrl.u32 %v1094_v42, 7 }
  0x35   :  { %v1671_v59 = vld [vmem:[#allocation3 + $0x8] sm:$0xff]  ;;  %v1487_v61 = vpack.c.bf16 %v288_v58, %v285_v57  ;;  %v291_v62 = vld [vmem:[#allocation6 + $0xa0] sm:$0xff]  ;;  %v1679_v1 = vld [vmem:[#allocation3 + $0x10] sm:$0xff] }
  0x36   :  { %v1673_v60 = vld [vmem:[#allocation3 + $0xc8] sm:$0xff]  ;;  %v1681_v2 = vld [vmem:[#allocation3 + $0xd0] sm:$0xff]  ;;  %v1491_v3 = vpack.c.bf16 %v294_v63, %v291_v62  ;;  %v242_v6 = vld [vmem:[#allocation3 + $0x18] sm:$0xff]  ;;  %v1100_v46 = vsub.s32 1, %v1738_v43 }
  0x37   :  { %1462 = vmatpush1.bf16.msra.mxu0 %v1461_v26  ;;  %1522 = vmatpush1.bf16.msra.mxu1 %v1461_v26  ;;  %v297_v4 = vld [vmem:[#allocation6 + $0xd0] sm:$0xff]  ;;  %v300_v5 = vld [vmem:[#allocation6 + $0xe8] sm:$0xff]  ;;  %v1687_v7 = vld [vmem:[#allocation3 + $0xd8] sm:$0xff] }
  0x38   :  { %1464 = vmatprep.subr.bf16.mxu0 %v1463_v27  ;;  %1515 = vmatprep.subr.bf16.mxu1 %v1463_v27  ;;  %v1495_v8 = vpack.c.bf16 %v300_v5, %v297_v4  ;;  %v303_v9 = vld [vmem:[#allocation6 + $0x100] sm:$0xff]  ;;  %v306_v10 = vld [vmem:[#allocation6 + $0x118] sm:$0xff]  ;;  %v309_v14 = vld [vmem:[#allocation6 + $0x130] sm:$0xff] }
  0x39   :  { %v243_v11 = vld [vmem:[#allocation3 + $0x20] sm:$0xff]  ;;  %v1499_v13 = vpack.c.bf16 %v306_v10, %v303_v9  ;;  %v312_v15 = vld [vmem:[#allocation6 + $0x148] sm:$0xff]  ;;  %v318_v20 = vld [vmem:[#allocation6 + $0x178] sm:$0xff] }
  0x3a   :  { %v1692_v12 = vld [vmem:[#allocation3 + $0xe0] sm:$0xff]  ;;  %v244_v16 = vld [vmem:[#allocation3 + $0x28] sm:$0xff]  ;;  %v1503_v18 = vpack.c.bf16 %v312_v15, %v309_v14  ;;  %v245_v21 = vld [vmem:[#allocation3 + $0x30] sm:$0xff] }
  0x3b   :  { %1466 = vmatpush1.bf16.msra.mxu0 %v1465_v32  ;;  %1523 = vmatpush1.bf16.msra.mxu1 %v1465_v32  ;;  %v1697_v17 = vld [vmem:[#allocation3 + $0xe8] sm:$0xff]  ;;  %v315_v19 = vld [vmem:[#allocation6 + $0x160] sm:$0xff]  ;;  %v1702_v22 = vld [vmem:[#allocation3 + $0xf0] sm:$0xff] }
  0x3c   :  { %1468 = vmatprep.subr.bf16.mxu0 %v1467_v33  ;;  %1516 = vmatprep.subr.bf16.mxu1 %v1467_v33  ;;  %v1507_v23 = vpack.c.bf16 %v318_v20, %v315_v19  ;;  %v246_v24 = vld [vmem:[#allocation3 + $0x38] sm:$0xff]  ;;  %v247_v26 = vld [vmem:[#allocation3 + $0x40] sm:$0xff]  ;;  %v248_v27 = vld [vmem:[#allocation3 + $0x48] sm:$0xff] }
  0x3d   :  { %v1707_v25 = vld [vmem:[#allocation3 + $0xf8] sm:$0xff]  ;;  %v249_v28 = vld [vmem:[#allocation3 + $0x50] sm:$0xff]  ;;  %v251_v30 = vld [vmem:[#allocation3 + $0x60] sm:$0xff] }
  0x3e   :  { %v250_v29 = vld [vmem:[#allocation3 + $0x58] sm:$0xff]  ;;  %v252_v31 = vld [vmem:[#allocation3 + $0x68] sm:$0xff]  ;;  %v253_v32 = vld [vmem:[#allocation3 + $0x70] sm:$0xff] }
  0x3f   :  { %1470 = vmatpush1.bf16.msra.mxu0 %v1469_v38  ;;  %1524 = vmatpush1.bf16.msra.mxu1 %v1469_v38  ;;  %v254_v33 = vld [vmem:[#allocation3 + $0x78] sm:$0xff]  ;;  %v255_v34 = vld [vmem:[#allocation3 + $0x80] sm:$0xff]  ;;  %v256_v35 = vld [vmem:[#allocation3 + $0x88] sm:$0xff] }
  0x40   :  { %1472 = vmatprep.subr.bf16.mxu0 %v1471_v39  ;;  %1517 = vmatprep.subr.bf16.mxu1 %v1471_v39  ;;  %v257_v36 = vld [vmem:[#allocation3 + $0x90] sm:$0xff]  ;;  %v258_v37 = vld [vmem:[#allocation3 + $0x98] sm:$0xff]  ;;  %v259_v38 = vld [vmem:[#allocation3 + $0xa0] sm:$0xff] }
  0x41   :  { %v260_v39 = vld [vmem:[#allocation3 + $0xa8] sm:$0xff]  ;;  %v261_v40 = vld [vmem:[#allocation3 + $0xb0] sm:$0xff]  ;;  %v262_v41 = vld [vmem:[#allocation3 + $0xb8] sm:$0xff] }
  0x43   :  { %1474 = vmatpush1.bf16.msra.mxu0 %v1473_v44  ;;  %1525 = vmatpush1.bf16.msra.mxu1 %v1473_v44  ;;  %v1096_v44 = vsub.s32 0, %v1738_v43 }
  0x44   :  { %1476 = vmatprep.subr.bf16.mxu0 %v1475_v45  ;;  %1518 = vmatprep.subr.bf16.mxu1 %v1475_v45  ;;  %v1744_v45 = vld [vmem:[%s1870_s2] sm:$0x7]  ;;  %s1614_s2 = smov [#allocation8]  }
  0x45   :  { %v1748_v47 = vrot.slane %v1744_v45, %v1096_v44  ;;  %s1306_s13 = sshll.u32 %s1614_s2, 4  ;;  %s1307_s13 = int_to_ptr.vmem [resolvable:$true] %s1306_s13 }
  0x46   :  { %s1579_s14 = scalar_lea.vmem %s1307_s13, 12288  ;;  %p1584_p3 = scmp.lt.s32.totalorder %s1307_s13, %s1307_s13 }
  0x47   :  { %1478 = vmatpush1.bf16.msra.mxu0 %v1477_v50  ;;  %1526 = vmatpush1.bf16.msra.mxu1 %v1477_v50  ;;  %p1580_p2 = scmp.ne.s32.totalorder %s1307_s13, %s1579_s14  ;;  %p1585_p4 = scmp.lt.s32.totalorder %s1579_s14, %s1579_s14 }
  0x48   :  { %1480 = vmatprep.subr.bf16.mxu1 %v1479_v51 }
  0x49   :  { %p1586_p5 = por %p1585_p4, %p1584_p3 }
  0x4a   :  { %384 = vmatmul.mubr.f32.vlgmr.msra.gmra.mrb[0].mxu0 %v1664_v54  ;;  %528 = vmatmul.mubr.f32.vlgmr.msra.gmra.mrb[0].mxu1 %v1666_v55 }
  0x4b   :  { %1482 = vmatpush3.bf16.msra.mxu1 %v1479_v51  ;;  %389 = vmatprep.mubr.f32.mxu0 %v1613_v0  ;;  %p1587_p6 = pnand %p1586_p5, %p1580_p2 }
  0x4c   :  { %533 = vmatprep.mubr.f32.mxu1 %v1613_v0  ;;  %1484 = vmatprep.subr.bf16.mxu1 %v1483_v56 }
  0x4e   :  { %390 = vmatmul.mubr.f32.gmra.mrb[2].mxu0 %v1671_v59  ;;  %534 = vmatmul.mubr.f32.gmra.mrb[2].mxu1 %v1673_v60 }
  0x4f   :  { %1486 = vmatpush3.bf16.msra.mxu1 %v1483_v56  ;;  %395 = vmatprep.mubr.f32.mxu0 %v1613_v0 }
  0x50   :  { %539 = vmatprep.mubr.f32.mxu1 %v1613_v0  ;;  %1488 = vmatprep.subr.bf16.mxu1 %v1487_v61 }
  0x52   :  { %396 = vmatmul.mubr.f32.gmra.mrb[4].mxu0 %v1679_v1  ;;  %540 = vmatmul.mubr.f32.gmra.mrb[4].mxu1 %v1681_v2 }
  0x53   :  { %1490 = vmatpush3.bf16.msra.mxu1 %v1487_v61  ;;  %401 = vmatprep.mubr.f32.mxu0 %v1613_v0 }
  0x54   :  { %545 = vmatprep.mubr.f32.mxu1 %v1613_v0  ;;  %1492 = vmatprep.subr.bf16.mxu1 %v1491_v3 }
  0x56   :  { %402 = vmatmul.mubr.f32.gmra.mrb[6].mxu0 %v242_v6  ;;  %546 = vmatmul.mubr.f32.gmra.mrb[6].mxu1 %v1687_v7 }
  0x57   :  { %1494 = vmatpush3.bf16.msra.mxu1 %v1491_v3  ;;  %407 = vmatprep.mubr.f32.mxu0 %v1613_v0 }
  0x58   :  { %551 = vmatprep.mubr.f32.mxu1 %v1613_v0  ;;  %1496 = vmatprep.subr.bf16.mxu1 %v1495_v8 }
  0x5a   :  { %408 = vmatmul.mubr.f32.gmra.mrb[8].mxu0 %v243_v11  ;;  %552 = vmatmul.mubr.f32.gmra.mrb[8].mxu1 %v1692_v12 }
  0x5b   :  { %1498 = vmatpush3.bf16.msra.mxu1 %v1495_v8  ;;  %413 = vmatprep.mubr.f32.mxu0 %v1613_v0 }
  0x5c   :  { %557 = vmatprep.mubr.f32.mxu1 %v1613_v0  ;;  %1500 = vmatprep.subr.bf16.mxu1 %v1499_v13 }
  0x5e   :  { %414 = vmatmul.mubr.f32.gmra.mrb[10].mxu0 %v244_v16  ;;  %558 = vmatmul.mubr.f32.gmra.mrb[10].mxu1 %v1697_v17 }
  0x5f   :  { %1502 = vmatpush3.bf16.msra.mxu1 %v1499_v13  ;;  %419 = vmatprep.mubr.f32.mxu0 %v1613_v0 }
  0x60   :  { %563 = vmatprep.mubr.f32.mxu1 %v1613_v0  ;;  %1504 = vmatprep.subr.bf16.mxu1 %v1503_v18 }
  0x62   :  { %420 = vmatmul.mubr.f32.gmra.mrb[12].mxu0 %v245_v21  ;;  %564 = vmatmul.mubr.f32.gmra.mrb[12].mxu1 %v1702_v22 }
  0x63   :  { %1506 = vmatpush3.bf16.msra.mxu1 %v1503_v18  ;;  %425 = vmatprep.mubr.f32.mxu0 %v1613_v0 }
  0x64   :  { %569 = vmatprep.mubr.f32.mxu1 %v1613_v0  ;;  %1508 = vmatprep.subr.bf16.mxu1 %v1507_v23 }
  0x66   :  { %426 = vmatmul.mubr.f32.gmra.mrb[14].mxu0 %v246_v24  ;;  %570 = vmatmul.mubr.f32.gmra.mrb[14].mxu1 %v1707_v25 }
  0x67   :  { %1510 = vmatpush3.bf16.msra.mxu1 %v1507_v23  ;;  %431 = vmatprep.mubr.f32.mxu0 %v1613_v0 }
  0x68   :  { %1399 = vmatprep.mubr.f32.mxu1 %v1664_v54 }
  0x6a   :  { %432 = vmatmul.mubr.f32.gmra.mrb[16].mxu0 %v247_v26  ;;  %1400 = vmatmul.mubr.f32.vlgmr.msra.gmra.mrb[16].mxu1 %v1671_v59 }
  0x6b   :  { %437 = vmatprep.mubr.f32.mxu0 %v1613_v0  ;;  %1402 = vmatprep.mubr.f32.mxu1 %v1679_v1 }
  0x6e   :  { %438 = vmatmul.mubr.f32.gmra.mrb[18].mxu0 %v248_v27  ;;  %1403 = vmatmul.mubr.f32.gmra.mrb[18].mxu1 %v242_v6 }
  0x6f   :  { %443 = vmatprep.mubr.f32.mxu0 %v1613_v0  ;;  %1405 = vmatprep.mubr.f32.mxu1 %v243_v11 }
  0x72   :  { %444 = vmatmul.mubr.f32.gmra.mrb[20].mxu0 %v249_v28  ;;  %1406 = vmatmul.mubr.f32.gmra.mrb[20].mxu1 %v244_v16 }
  0x73   :  { %449 = vmatprep.mubr.f32.mxu0 %v1613_v0  ;;  %1408 = vmatprep.mubr.f32.mxu1 %v245_v21 }
  0x76   :  { %450 = vmatmul.mubr.f32.gmra.mrb[22].mxu0 %v250_v29  ;;  %1409 = vmatmul.mubr.f32.gmra.mrb[22].mxu1 %v246_v24 }
  0x77   :  { %455 = vmatprep.mubr.f32.mxu0 %v1613_v0  ;;  %1411 = vmatprep.mubr.f32.mxu1 %v247_v26 }
  0x7a   :  { %456 = vmatmul.mubr.f32.gmra.mrb[24].mxu0 %v251_v30  ;;  %1412 = vmatmul.mubr.f32.gmra.mrb[24].mxu1 %v248_v27 }
  0x7b   :  { %461 = vmatprep.mubr.f32.mxu0 %v1613_v0  ;;  %1414 = vmatprep.mubr.f32.mxu1 %v249_v28 }
  0x7e   :  { %462 = vmatmul.mubr.f32.gmra.mrb[26].mxu0 %v252_v31  ;;  %1415 = vmatmul.mubr.f32.gmra.mrb[26].mxu1 %v250_v29 }
  0x7f   :  { %467 = vmatprep.mubr.f32.mxu0 %v1613_v0  ;;  %1417 = vmatprep.mubr.f32.mxu1 %v251_v30 }
  0x82   :  { %468 = vmatmul.mubr.f32.gmra.mrb[28].mxu0 %v253_v32  ;;  %1418 = vmatmul.mubr.f32.gmra.mrb[28].mxu1 %v252_v31 }
  0x83   :  { %473 = vmatprep.mubr.f32.mxu0 %v1613_v0  ;;  %1420 = vmatprep.mubr.f32.mxu1 %v253_v32 }
  0x86   :  { %474 = vmatmul.mubr.f32.gmra.mrb[30].mxu0 %v254_v33  ;;  %1421 = vmatmul.mubr.f32.gmra.mrb[30].mxu1 %v254_v33 }
  0x87   :  { %479 = vmatprep.mubr.f32.mxu0 %v1613_v0  ;;  %1423 = vmatprep.mubr.f32.mxu1 %v255_v34 }
  0x8a   :  { %480 = vmatmul.mubr.f32.gmra.mrb[32].mxu0 %v255_v34  ;;  %1424 = vmatmul.mubr.f32.gmra.mrb[32].mxu1 %v256_v35 }
  0x8b   :  { %485 = vmatprep.mubr.f32.mxu0 %v1613_v0  ;;  %1426 = vmatprep.mubr.f32.mxu1 %v257_v36 }
  0x8e   :  { %486 = vmatmul.mubr.f32.gmra.mrb[34].mxu0 %v256_v35  ;;  %1427 = vmatmul.mubr.f32.gmra.mrb[34].mxu1 %v258_v37 }
  0x8f   :  { %491 = vmatprep.mubr.f32.mxu0 %v1613_v0  ;;  %1429 = vmatprep.mubr.f32.mxu1 %v259_v38 }
  0x92   :  { %492 = vmatmul.mubr.f32.gmra.mrb[36].mxu0 %v257_v36  ;;  %1430 = vmatmul.mubr.f32.gmra.mrb[36].mxu1 %v260_v39 }
  0x93   :  { %497 = vmatprep.mubr.f32.mxu0 %v1613_v0  ;;  %1432 = vmatprep.mubr.f32.mxu1 %v261_v40 }
  0x96   :  { %498 = vmatmul.mubr.f32.gmra.mrb[38].mxu0 %v258_v37  ;;  %1433 = vmatmul.mubr.f32.gmra.mrb[38].mxu1 %v262_v41 }
  0x97   :  { %503 = vmatprep.mubr.f32.mxu0 %v1613_v0  ;;  %1435 = vmatprep.mubr.f32.mxu1 %v1666_v55 }
  0x9a   :  { %504 = vmatmul.mubr.f32.gmra.mrb[40].mxu0 %v259_v38  ;;  %1436 = vmatmul.mubr.f32.gmra.mrb[40].mxu1 %v1673_v60 }
  0x9b   :  { %509 = vmatprep.mubr.f32.mxu0 %v1613_v0  ;;  %1438 = vmatprep.mubr.f32.mxu1 %v1681_v2 }
  0x9e   :  { %510 = vmatmul.mubr.f32.gmra.mrb[42].mxu0 %v260_v39  ;;  %1439 = vmatmul.mubr.f32.gmra.mrb[42].mxu1 %v1687_v7  ;;  %v1104_v39 = vsub.s32 2, %v1738_v43 }
  0x9f   :  { %515 = vmatprep.mubr.f32.mxu0 %v1613_v0  ;;  %1441 = vmatprep.mubr.f32.mxu1 %v1692_v12 }
  0xa2   :  { %516 = vmatmul.mubr.f32.gmra.mrb[44].mxu0 %v261_v40  ;;  %1442 = vmatmul.mubr.f32.gmra.mrb[44].mxu1 %v1697_v17 }
  0xa3   :  { %521 = vmatprep.mubr.f32.mxu0 %v1613_v0  ;;  %1444 = vmatprep.mubr.f32.mxu1 %v1702_v22  ;;  %v1751_v0 = vrot.slane %v1744_v45, %v1100_v46 }
  0xa6   :  { %522 = vmatmul.mubr.f32.gmra.mrb[46].mxu0 %v262_v41  ;;  %1445 = vmatmul.mubr.f32.gmra.mrb[46].mxu1 %v1707_v25 }
 0x11d   :  { %v385_v48 = vpop.f32.mrb[0].mxu0  ;;  %v529_v49 = vpop.f32.mrb[0].mxu1 }
 0x11e   :  { %v1109_v50 = vadd.f32 %v1748_v47, %v385_v48  ;;  %v1181_v51 = vadd.f32 %v1748_v47, %v529_v49  ;;  %v387_v52 = vpop.f32.mrb[1].mxu0  ;;  %v531_v53 = vpop.f32.mrb[1].mxu1 }
 0x11f   :  { %v1110_v54 = vadd.f32 %v1751_v0, %v387_v52  ;;  %v1182_v55 = vadd.f32 %v1751_v0, %v531_v53 }
 0x120   :  { %1205 = vst [vmem:[#allocation8] sm:$0xff] %v1109_v50  ;;  %1277 = vst [vmem:[#allocation8 + $0x240] sm:$0xff] %v1181_v51  ;;  %v1785_v51 = vrot.slane %v1744_v45, %v1104_v39 }
 0x121   :  { %1206 = vst [vmem:[#allocation8 + $0x8] sm:$0xff] %v1110_v54  ;;  %1278 = vst [vmem:[#allocation8 + $0x248] sm:$0xff] %v1182_v55  ;;  %v391_v56 = vpop.f32.mrb[2].mxu0  ;;  %v535_v57 = vpop.f32.mrb[2].mxu1 }
 0x122   :  { %v1112_v58 = vadd.f32 %v1748_v47, %v391_v56  ;;  %v1184_v59 = vadd.f32 %v1748_v47, %v535_v57  ;;  %v393_v60 = vpop.f32.mrb[3].mxu0  ;;  %v537_v61 = vpop.f32.mrb[3].mxu1 }
 0x123   :  { %v1113_v62 = vadd.f32 %v1751_v0, %v393_v60  ;;  %v1185_v63 = vadd.f32 %v1751_v0, %v537_v61 }
 0x124   :  { %1208 = vst [vmem:[#allocation8 + $0x18] sm:$0xff] %v1112_v58  ;;  %1280 = vst [vmem:[#allocation8 + $0x258] sm:$0xff] %v1184_v59 }
 0x125   :  { %1209 = vst [vmem:[#allocation8 + $0x20] sm:$0xff] %v1113_v62  ;;  %1281 = vst [vmem:[#allocation8 + $0x260] sm:$0xff] %v1185_v63  ;;  %v397_v1 = vpop.f32.mrb[4].mxu0  ;;  %v541_v2 = vpop.f32.mrb[4].mxu1 }
 0x126   :  { %v1115_v3 = vadd.f32 %v1748_v47, %v397_v1  ;;  %v1187_v4 = vadd.f32 %v1748_v47, %v541_v2  ;;  %v399_v5 = vpop.f32.mrb[5].mxu0  ;;  %v543_v6 = vpop.f32.mrb[5].mxu1 }
 0x127   :  { %v1116_v7 = vadd.f32 %v1751_v0, %v399_v5  ;;  %v1188_v8 = vadd.f32 %v1751_v0, %v543_v6 }
 0x128   :  { %1211 = vst [vmem:[#allocation8 + $0x30] sm:$0xff] %v1115_v3  ;;  %1283 = vst [vmem:[#allocation8 + $0x270] sm:$0xff] %v1187_v4 }
 0x129   :  { %1212 = vst [vmem:[#allocation8 + $0x38] sm:$0xff] %v1116_v7  ;;  %1284 = vst [vmem:[#allocation8 + $0x278] sm:$0xff] %v1188_v8  ;;  %v403_v9 = vpop.f32.mrb[6].mxu0  ;;  %v547_v10 = vpop.f32.mrb[6].mxu1 }
 0x12a   :  { %v1118_v11 = vadd.f32 %v1748_v47, %v403_v9  ;;  %v1190_v12 = vadd.f32 %v1748_v47, %v547_v10  ;;  %v405_v13 = vpop.f32.mrb[7].mxu0  ;;  %v549_v14 = vpop.f32.mrb[7].mxu1 }
 0x12b   :  { %v1119_v15 = vadd.f32 %v1751_v0, %v405_v13  ;;  %v1191_v16 = vadd.f32 %v1751_v0, %v549_v14 }
 0x12c   :  { %1214 = vst [vmem:[#allocation8 + $0x48] sm:$0xff] %v1118_v11  ;;  %1286 = vst [vmem:[#allocation8 + $0x288] sm:$0xff] %v1190_v12 }
 0x12d   :  { %1215 = vst [vmem:[#allocation8 + $0x50] sm:$0xff] %v1119_v15  ;;  %1287 = vst [vmem:[#allocation8 + $0x290] sm:$0xff] %v1191_v16  ;;  %v409_v17 = vpop.f32.mrb[8].mxu0  ;;  %v553_v18 = vpop.f32.mrb[8].mxu1 }
 0x12e   :  { %v1121_v19 = vadd.f32 %v1748_v47, %v409_v17  ;;  %v1193_v20 = vadd.f32 %v1748_v47, %v553_v18  ;;  %v411_v21 = vpop.f32.mrb[9].mxu0  ;;  %v555_v22 = vpop.f32.mrb[9].mxu1 }
 0x12f   :  { %v1122_v23 = vadd.f32 %v1751_v0, %v411_v21  ;;  %v1194_v24 = vadd.f32 %v1751_v0, %v555_v22 }
 0x130   :  { %1217 = vst [vmem:[#allocation8 + $0x60] sm:$0xff] %v1121_v19  ;;  %1289 = vst [vmem:[#allocation8 + $0x2a0] sm:$0xff] %v1193_v20 }
 0x131   :  { %1218 = vst [vmem:[#allocation8 + $0x68] sm:$0xff] %v1122_v23  ;;  %1290 = vst [vmem:[#allocation8 + $0x2a8] sm:$0xff] %v1194_v24  ;;  %v415_v25 = vpop.f32.mrb[10].mxu0  ;;  %v559_v26 = vpop.f32.mrb[10].mxu1 }
 0x132   :  { %v1124_v27 = vadd.f32 %v1748_v47, %v415_v25  ;;  %v1196_v28 = vadd.f32 %v1748_v47, %v559_v26  ;;  %v417_v29 = vpop.f32.mrb[11].mxu0  ;;  %v561_v30 = vpop.f32.mrb[11].mxu1 }
 0x133   :  { %v1125_v31 = vadd.f32 %v1751_v0, %v417_v29  ;;  %v1197_v32 = vadd.f32 %v1751_v0, %v561_v30 }
 0x134   :  { %1220 = vst [vmem:[#allocation8 + $0x78] sm:$0xff] %v1124_v27  ;;  %1292 = vst [vmem:[#allocation8 + $0x2b8] sm:$0xff] %v1196_v28 }
 0x135   :  { %1221 = vst [vmem:[#allocation8 + $0x80] sm:$0xff] %v1125_v31  ;;  %1293 = vst [vmem:[#allocation8 + $0x2c0] sm:$0xff] %v1197_v32  ;;  %v421_v33 = vpop.f32.mrb[12].mxu0  ;;  %v565_v34 = vpop.f32.mrb[12].mxu1 }
 0x136   :  { %v1127_v35 = vadd.f32 %v1748_v47, %v421_v33  ;;  %v1199_v36 = vadd.f32 %v1748_v47, %v565_v34  ;;  %v423_v37 = vpop.f32.mrb[13].mxu0  ;;  %v567_v38 = vpop.f32.mrb[13].mxu1 }
 0x137   :  { %v1128_v40 = vadd.f32 %v1751_v0, %v423_v37  ;;  %v1200_v41 = vadd.f32 %v1751_v0, %v567_v38 }
 0x138   :  { %1223 = vst [vmem:[#allocation8 + $0x90] sm:$0xff] %v1127_v35  ;;  %1295 = vst [vmem:[#allocation8 + $0x2d0] sm:$0xff] %v1199_v36 }
 0x139   :  { %1224 = vst [vmem:[#allocation8 + $0x98] sm:$0xff] %v1128_v40  ;;  %1296 = vst [vmem:[#allocation8 + $0x2d8] sm:$0xff] %v1200_v41  ;;  %v427_v42 = vpop.f32.mrb[14].mxu0  ;;  %v571_v44 = vpop.f32.mrb[14].mxu1 }
 0x13a   :  { %v1130_v46 = vadd.f32 %v1748_v47, %v427_v42  ;;  %v1202_v48 = vadd.f32 %v1748_v47, %v571_v44  ;;  %v429_v49 = vpop.f32.mrb[15].mxu0  ;;  %v573_v50 = vpop.f32.mrb[15].mxu1 }
 0x13b   :  { %v1131_v43 = vadd.f32 %v1751_v0, %v429_v49  ;;  %v1203_v52 = vadd.f32 %v1751_v0, %v573_v50 }
 0x13c   :  { %1226 = vst [vmem:[#allocation8 + $0xa8] sm:$0xff] %v1130_v46  ;;  %1298 = vst [vmem:[#allocation8 + $0x2e8] sm:$0xff] %v1202_v48 }
 0x13d   :  { %1227 = vst [vmem:[#allocation8 + $0xb0] sm:$0xff] %v1131_v43  ;;  %1299 = vst [vmem:[#allocation8 + $0x2f0] sm:$0xff] %v1203_v52  ;;  %v433_v53 = vpop.f32.mrb[16].mxu0  ;;  %v1401_v54 = vpop.f32.mrb[16].mxu1 }
 0x13e   :  { %v1133_v55 = vadd.f32 %v1748_v47, %v433_v53  ;;  %v1114_v56 = vadd.f32 %v1401_v54, %v1785_v51  ;;  %v435_v57 = vpop.f32.mrb[17].mxu0  ;;  %v642_v58 = vpop.f32.mrb[17].mxu1 }
 0x13f   :  { %v1134_v59 = vadd.f32 %v1751_v0, %v435_v57  ;;  %v1111_v45 = vadd.f32 %v1785_v51, %v642_v58 }
 0x140   :  { %1229 = vst [vmem:[#allocation8 + $0xc0] sm:$0xff] %v1133_v55  ;;  %1210 = vst [vmem:[#allocation8 + $0x28] sm:$0xff] %v1114_v56 }
 0x141   :  { %1230 = vst [vmem:[#allocation8 + $0xc8] sm:$0xff] %v1134_v59  ;;  %1207 = vst [vmem:[#allocation8 + $0x10] sm:$0xff] %v1111_v45  ;;  %v439_v60 = vpop.f32.mrb[18].mxu0  ;;  %v1404_v61 = vpop.f32.mrb[18].mxu1 }
 0x142   :  { %v1136_v62 = vadd.f32 %v1748_v47, %v439_v60  ;;  %v1120_v63 = vadd.f32 %v1404_v61, %v1785_v51  ;;  %v441_v1 = vpop.f32.mrb[19].mxu0  ;;  %v652_v2 = vpop.f32.mrb[19].mxu1 }
 0x143   :  { %v1137_v3 = vadd.f32 %v1751_v0, %v441_v1  ;;  %v1117_v4 = vadd.f32 %v1785_v51, %v652_v2 }
 0x144   :  { %1232 = vst [vmem:[#allocation8 + $0xd8] sm:$0xff] %v1136_v62  ;;  %1216 = vst [vmem:[#allocation8 + $0x58] sm:$0xff] %v1120_v63 }
 0x145   :  { %1233 = vst [vmem:[#allocation8 + $0xe0] sm:$0xff] %v1137_v3  ;;  %1213 = vst [vmem:[#allocation8 + $0x40] sm:$0xff] %v1117_v4  ;;  %v445_v5 = vpop.f32.mrb[20].mxu0  ;;  %v1407_v6 = vpop.f32.mrb[20].mxu1 }
 0x146   :  { %v1139_v7 = vadd.f32 %v1748_v47, %v445_v5  ;;  %v1126_v8 = vadd.f32 %v1407_v6, %v1785_v51  ;;  %v447_v9 = vpop.f32.mrb[21].mxu0  ;;  %v662_v10 = vpop.f32.mrb[21].mxu1 }
 0x147   :  { %v1140_v11 = vadd.f32 %v1751_v0, %v447_v9  ;;  %v1123_v12 = vadd.f32 %v1785_v51, %v662_v10 }
 0x148   :  { %1235 = vst [vmem:[#allocation8 + $0xf0] sm:$0xff] %v1139_v7  ;;  %1222 = vst [vmem:[#allocation8 + $0x88] sm:$0xff] %v1126_v8 }
 0x149   :  { %1236 = vst [vmem:[#allocation8 + $0xf8] sm:$0xff] %v1140_v11  ;;  %1219 = vst [vmem:[#allocation8 + $0x70] sm:$0xff] %v1123_v12  ;;  %v451_v13 = vpop.f32.mrb[22].mxu0  ;;  %v1410_v14 = vpop.f32.mrb[22].mxu1 }
 0x14a   :  { %v1142_v15 = vadd.f32 %v1748_v47, %v451_v13  ;;  %v1132_v16 = vadd.f32 %v1410_v14, %v1785_v51  ;;  %v453_v17 = vpop.f32.mrb[23].mxu0  ;;  %v672_v18 = vpop.f32.mrb[23].mxu1 }
 0x14b   :  { %v1143_v19 = vadd.f32 %v1751_v0, %v453_v17  ;;  %v1129_v20 = vadd.f32 %v1785_v51, %v672_v18 }
 0x14c   :  { %1238 = vst [vmem:[#allocation8 + $0x108] sm:$0xff] %v1142_v15  ;;  %1228 = vst [vmem:[#allocation8 + $0xb8] sm:$0xff] %v1132_v16 }
 0x14d   :  { %1239 = vst [vmem:[#allocation8 + $0x110] sm:$0xff] %v1143_v19  ;;  %1225 = vst [vmem:[#allocation8 + $0xa0] sm:$0xff] %v1129_v20  ;;  %v457_v21 = vpop.f32.mrb[24].mxu0  ;;  %v1413_v22 = vpop.f32.mrb[24].mxu1 }
 0x14e   :  { %v1145_v23 = vadd.f32 %v1748_v47, %v457_v21  ;;  %v1138_v24 = vadd.f32 %v1413_v22, %v1785_v51  ;;  %v459_v25 = vpop.f32.mrb[25].mxu0  ;;  %v682_v26 = vpop.f32.mrb[25].mxu1 }
 0x14f   :  { %v1146_v27 = vadd.f32 %v1751_v0, %v459_v25  ;;  %v1135_v28 = vadd.f32 %v1785_v51, %v682_v26 }
 0x150   :  { %1241 = vst [vmem:[#allocation8 + $0x120] sm:$0xff] %v1145_v23  ;;  %1234 = vst [vmem:[#allocation8 + $0xe8] sm:$0xff] %v1138_v24 }
 0x151   :  { %1242 = vst [vmem:[#allocation8 + $0x128] sm:$0xff] %v1146_v27  ;;  %1231 = vst [vmem:[#allocation8 + $0xd0] sm:$0xff] %v1135_v28  ;;  %v463_v29 = vpop.f32.mrb[26].mxu0  ;;  %v1416_v30 = vpop.f32.mrb[26].mxu1 }
 0x152   :  { %v1148_v31 = vadd.f32 %v1748_v47, %v463_v29  ;;  %v1144_v32 = vadd.f32 %v1416_v30, %v1785_v51  ;;  %v465_v33 = vpop.f32.mrb[27].mxu0  ;;  %v692_v34 = vpop.f32.mrb[27].mxu1 }
 0x153   :  { %v1149_v35 = vadd.f32 %v1751_v0, %v465_v33  ;;  %v1141_v36 = vadd.f32 %v1785_v51, %v692_v34 }
 0x154   :  { %1244 = vst [vmem:[#allocation8 + $0x138] sm:$0xff] %v1148_v31  ;;  %1240 = vst [vmem:[#allocation8 + $0x118] sm:$0xff] %v1144_v32 }
 0x155   :  { %1245 = vst [vmem:[#allocation8 + $0x140] sm:$0xff] %v1149_v35  ;;  %1237 = vst [vmem:[#allocation8 + $0x100] sm:$0xff] %v1141_v36  ;;  %v469_v37 = vpop.f32.mrb[28].mxu0  ;;  %v1419_v38 = vpop.f32.mrb[28].mxu1 }
 0x156   :  { %v1151_v39 = vadd.f32 %v1748_v47, %v469_v37  ;;  %v1150_v40 = vadd.f32 %v1419_v38, %v1785_v51  ;;  %v471_v41 = vpop.f32.mrb[29].mxu0  ;;  %v702_v42 = vpop.f32.mrb[29].mxu1 }
 0x157   :  { %v1152_v44 = vadd.f32 %v1751_v0, %v471_v41  ;;  %v1147_v46 = vadd.f32 %v1785_v51, %v702_v42 }
 0x158   :  { %1247 = vst [vmem:[#allocation8 + $0x150] sm:$0xff] %v1151_v39  ;;  %1246 = vst [vmem:[#allocation8 + $0x148] sm:$0xff] %v1150_v40 }
 0x159   :  { %1248 = vst [vmem:[#allocation8 + $0x158] sm:$0xff] %v1152_v44  ;;  %1243 = vst [vmem:[#allocation8 + $0x130] sm:$0xff] %v1147_v46  ;;  %v475_v48 = vpop.f32.mrb[30].mxu0  ;;  %v1422_v49 = vpop.f32.mrb[30].mxu1 }
 0x15a   :  { %v1154_v50 = vadd.f32 %v1748_v47, %v475_v48  ;;  %v1156_v43 = vadd.f32 %v1422_v49, %v1785_v51  ;;  %v477_v52 = vpop.f32.mrb[31].mxu0  ;;  %v712_v53 = vpop.f32.mrb[31].mxu1 }
 0x15b   :  { %v1155_v54 = vadd.f32 %v1751_v0, %v477_v52  ;;  %v1153_v55 = vadd.f32 %v1785_v51, %v712_v53 }
 0x15c   :  { %1250 = vst [vmem:[#allocation8 + $0x168] sm:$0xff] %v1154_v50  ;;  %1252 = vst [vmem:[#allocation8 + $0x178] sm:$0xff] %v1156_v43 }
 0x15d   :  { %1251 = vst [vmem:[#allocation8 + $0x170] sm:$0xff] %v1155_v54  ;;  %1249 = vst [vmem:[#allocation8 + $0x160] sm:$0xff] %v1153_v55  ;;  %v481_v56 = vpop.f32.mrb[32].mxu0  ;;  %v1425_v57 = vpop.f32.mrb[32].mxu1 }
 0x15e   :  { %v1157_v58 = vadd.f32 %v1748_v47, %v481_v56  ;;  %v1162_v59 = vadd.f32 %v1425_v57, %v1785_v51  ;;  %v483_v45 = vpop.f32.mrb[33].mxu0  ;;  %v722_v60 = vpop.f32.mrb[33].mxu1 }
 0x15f   :  { %v1158_v61 = vadd.f32 %v1751_v0, %v483_v45  ;;  %v1159_v62 = vadd.f32 %v1785_v51, %v722_v60 }
 0x160   :  { %1253 = vst [vmem:[#allocation8 + $0x180] sm:$0xff] %v1157_v58  ;;  %1258 = vst [vmem:[#allocation8 + $0x1a8] sm:$0xff] %v1162_v59 }
 0x161   :  { %1254 = vst [vmem:[#allocation8 + $0x188] sm:$0xff] %v1158_v61  ;;  %1255 = vst [vmem:[#allocation8 + $0x190] sm:$0xff] %v1159_v62  ;;  %v487_v63 = vpop.f32.mrb[34].mxu0  ;;  %v1428_v1 = vpop.f32.mrb[34].mxu1 }
 0x162   :  { %v1160_v2 = vadd.f32 %v1748_v47, %v487_v63  ;;  %v1168_v3 = vadd.f32 %v1428_v1, %v1785_v51  ;;  %v489_v4 = vpop.f32.mrb[35].mxu0  ;;  %v732_v5 = vpop.f32.mrb[35].mxu1 }
 0x163   :  { %v1161_v6 = vadd.f32 %v1751_v0, %v489_v4  ;;  %v1165_v7 = vadd.f32 %v1785_v51, %v732_v5 }
 0x164   :  { %1256 = vst [vmem:[#allocation8 + $0x198] sm:$0xff] %v1160_v2  ;;  %1264 = vst [vmem:[#allocation8 + $0x1d8] sm:$0xff] %v1168_v3 }
 0x165   :  { %1257 = vst [vmem:[#allocation8 + $0x1a0] sm:$0xff] %v1161_v6  ;;  %1261 = vst [vmem:[#allocation8 + $0x1c0] sm:$0xff] %v1165_v7  ;;  %v493_v8 = vpop.f32.mrb[36].mxu0  ;;  %v1431_v9 = vpop.f32.mrb[36].mxu1 }
 0x166   :  { %v1163_v10 = vadd.f32 %v1748_v47, %v493_v8  ;;  %v1174_v11 = vadd.f32 %v1431_v9, %v1785_v51  ;;  %v495_v12 = vpop.f32.mrb[37].mxu0  ;;  %v742_v13 = vpop.f32.mrb[37].mxu1 }
 0x167   :  { %v1164_v14 = vadd.f32 %v1751_v0, %v495_v12  ;;  %v1171_v15 = vadd.f32 %v1785_v51, %v742_v13 }
 0x168   :  { %1259 = vst [vmem:[#allocation8 + $0x1b0] sm:$0xff] %v1163_v10  ;;  %1270 = vst [vmem:[#allocation8 + $0x208] sm:$0xff] %v1174_v11 }
 0x169   :  { %1260 = vst [vmem:[#allocation8 + $0x1b8] sm:$0xff] %v1164_v14  ;;  %1267 = vst [vmem:[#allocation8 + $0x1f0] sm:$0xff] %v1171_v15  ;;  %v499_v16 = vpop.f32.mrb[38].mxu0  ;;  %v1434_v17 = vpop.f32.mrb[38].mxu1 }
 0x16a   :  { %v1166_v18 = vadd.f32 %v1748_v47, %v499_v16  ;;  %v1180_v19 = vadd.f32 %v1434_v17, %v1785_v51  ;;  %v501_v20 = vpop.f32.mrb[39].mxu0  ;;  %v752_v21 = vpop.f32.mrb[39].mxu1 }
 0x16b   :  { %v1167_v22 = vadd.f32 %v1751_v0, %v501_v20  ;;  %v1177_v23 = vadd.f32 %v1785_v51, %v752_v21 }
 0x16c   :  { %1262 = vst [vmem:[#allocation8 + $0x1c8] sm:$0xff] %v1166_v18  ;;  %1276 = vst [vmem:[#allocation8 + $0x238] sm:$0xff] %v1180_v19 }
 0x16d   :  { %1263 = vst [vmem:[#allocation8 + $0x1d0] sm:$0xff] %v1167_v22  ;;  %1273 = vst [vmem:[#allocation8 + $0x220] sm:$0xff] %v1177_v23  ;;  %v505_v24 = vpop.f32.mrb[40].mxu0  ;;  %v1437_v25 = vpop.f32.mrb[40].mxu1 }
 0x16e   :  { %v1169_v26 = vadd.f32 %v1748_v47, %v505_v24  ;;  %v1186_v27 = vadd.f32 %v1437_v25, %v1785_v51  ;;  %v507_v28 = vpop.f32.mrb[41].mxu0  ;;  %v762_v29 = vpop.f32.mrb[41].mxu1 }
 0x16f   :  { %v1170_v30 = vadd.f32 %v1751_v0, %v507_v28  ;;  %v1183_v31 = vadd.f32 %v1785_v51, %v762_v29 }
 0x170   :  { %1265 = vst [vmem:[#allocation8 + $0x1e0] sm:$0xff] %v1169_v26  ;;  %1282 = vst [vmem:[#allocation8 + $0x268] sm:$0xff] %v1186_v27 }
 0x171   :  { %1266 = vst [vmem:[#allocation8 + $0x1e8] sm:$0xff] %v1170_v30  ;;  %1279 = vst [vmem:[#allocation8 + $0x250] sm:$0xff] %v1183_v31  ;;  %v511_v32 = vpop.f32.mrb[42].mxu0  ;;  %v1440_v33 = vpop.f32.mrb[42].mxu1 }
 0x172   :  { %v1172_v34 = vadd.f32 %v1748_v47, %v511_v32  ;;  %v1192_v35 = vadd.f32 %v1440_v33, %v1785_v51  ;;  %v513_v36 = vpop.f32.mrb[43].mxu0  ;;  %v772_v37 = vpop.f32.mrb[43].mxu1 }
 0x173   :  { %v1173_v38 = vadd.f32 %v1751_v0, %v513_v36  ;;  %v1189_v39 = vadd.f32 %v1785_v51, %v772_v37 }
 0x174   :  { %1268 = vst [vmem:[#allocation8 + $0x1f8] sm:$0xff] %v1172_v34  ;;  %1288 = vst [vmem:[#allocation8 + $0x298] sm:$0xff] %v1192_v35 }
 0x175   :  { %1269 = vst [vmem:[#allocation8 + $0x200] sm:$0xff] %v1173_v38  ;;  %1285 = vst [vmem:[#allocation8 + $0x280] sm:$0xff] %v1189_v39  ;;  %v517_v40 = vpop.f32.mrb[44].mxu0  ;;  %v1443_v41 = vpop.f32.mrb[44].mxu1 }
 0x176   :  { %v1175_v42 = vadd.f32 %v1748_v47, %v517_v40  ;;  %v1198_v44 = vadd.f32 %v1443_v41, %v1785_v51  ;;  %v519_v46 = vpop.f32.mrb[45].mxu0  ;;  %v782_v48 = vpop.f32.mrb[45].mxu1 }
 0x177   :  { %v1176_v49 = vadd.f32 %v1751_v0, %v519_v46  ;;  %v1195_v50 = vadd.f32 %v1785_v51, %v782_v48 }
 0x178   :  { %1271 = vst [vmem:[#allocation8 + $0x210] sm:$0xff] %v1175_v42  ;;  %1294 = vst [vmem:[#allocation8 + $0x2c8] sm:$0xff] %v1198_v44 }
 0x179   :  { %1272 = vst [vmem:[#allocation8 + $0x218] sm:$0xff] %v1176_v49  ;;  %1291 = vst [vmem:[#allocation8 + $0x2b0] sm:$0xff] %v1195_v50  ;;  %v523_v43 = vpop.f32.mrb[46].mxu0  ;;  %v1446_v52 = vpop.f32.mrb[46].mxu1 }
 0x17a   :  { %v1178_v53 = vadd.f32 %v1748_v47, %v523_v43  ;;  %v1204_v54 = vadd.f32 %v1446_v52, %v1785_v51  ;;  %v525_v55 = vpop.f32.mrb[47].mxu0  ;;  %v792_v56 = vpop.f32.mrb[47].mxu1 }
 0x17b   :  { %v1179_v57 = vadd.f32 %v1751_v0, %v525_v55  ;;  %v1201_v58 = vadd.f32 %v1785_v51, %v792_v56 }
 0x17c   :  { %1274 = vst [vmem:[#allocation8 + $0x228] sm:$0xff] %v1178_v53  ;;  %1300 = vst [vmem:[#allocation8 + $0x2f8] sm:$0xff] %v1204_v54 }
 0x17d   :  { %1275 = vst [vmem:[#allocation8 + $0x230] sm:$0xff] %v1179_v57  ;;  %1297 = vst [vmem:[#allocation8 + $0x2e0] sm:$0xff] %v1201_v58 }
 0x17e   :  { %1590 = shalt.err (!%p1587_p6)
}
 0x17f   :  { %s1591_s17 = scalar_lea.hbm %s1871_s3, 12288 }
 0x180   :  { %p1592_p7 = scmp.ne.s32.totalorder %s1871_s3, %s1591_s17  ;;  %p1595_p8 = scmp.lt.u32.totalorder %s1591_s17, %s1871_s3 }
 0x182   :  { %p1597_p9 = pnand %p1595_p8, %p1592_p7 }
 0x184   :  { %1600 = shalt.err (!%p1597_p9)
}
 0x185   :  { %1312 = dma.vmem_to_hbm [thread:$0]  %s1307_s13, 12288, %s1871_s3, [#allocation5], %s1611_s0, %s1611_s0, %s1612_s9  }
 0x186   :  { %1605 = dma.done.wait [#allocation5], 12288  }
 0x187   :  { %1606 = vsyncadd [#allocation5], 4294955008 }
 0x188   :  { %1316 = vsyncpa [#allocation4], 1 }
 0x189   :  { %1317 = vsyncpa [#allocation7], 1 }
 0x18a   :  { %1318 = vsyncpa [#allocation5], 1 }

</bundles_post_ra>
